<compile_context>
chip_gen: v6e
topology: v6e:2x2x1
jax: 0.10.0
libtpu: 0.0.40
codegen_flags: <defaults>
</compile_context>

<pallas_src>
import numpy as np
import jax
import jax.numpy as jnp
from jax.experimental import pallas as pl
from jax.experimental.pallas import tpu as pltpu


def _round_up(a, b):
    return ((a + b - 1) // b) * b


def _thresholds(bit, all_positive):
    if all_positive:
        return (0, 1) if bit == 1 else (0, 2 ** bit - 1)
    return (-1, 1) if bit == 1 else (-2 ** (bit - 1), 2 ** (bit - 1) - 1)


# ---------------------------------------------------------------------------
# Fused Pallas kernel (per C-tile): abs-mean init + scale math + quant-dequant
# ---------------------------------------------------------------------------
def _make_fused_lsq_kernel(thd_neg, thd_pos, k_true, all_positive):
    mult = np.float32(4.0 if all_positive else 2.0)
    sqrt_thd = np.float32(float(thd_pos) ** 0.5)
    inv_k = np.float32(1.0 / float(k_true))

    def kernel(init_ref, x_ref, s_ref, xq_ref, scale_ref, s_out_ref):
        # init_ref: (1,) int32 in SMEM (scalar prefetch)
        # x_ref/xq_ref: (TC, K) native weight dtype;  s_*: (TC, 1) f32
        x = x_ref[...].astype(jnp.float32)

        # --- init_from(x): per-channel mean(|x|) over the true K (Mosaic masks
        #     the lane padding of the non-128-aligned minor dim in the reduce).
        absmean = jnp.sum(jnp.abs(x), axis=-1, keepdims=True) * inv_k      # (TC,1)
        init_val = (mult * absmean) / sqrt_thd
        s_new = jnp.where(init_ref[0] == 0, init_val, s_ref[...])
        s_out_ref[...] = s_new

        # --- clip(alpha, 1e-5) forward value. Result is a positive NORMAL f32;
        #     the exponent-field frexp below relies on that (do not lower eps
        #     below the smallest normal ~1.18e-38).
        eps = jnp.float32(1e-5)
        s_scale = jnp.where(s_new > eps, s_new, eps)

        # --- batch_frexp(bit=8): scale = floor(m*2^8 + 0.5) * 2^(e-8), m in [0.5,1)
        #     frexp via exact exponent-field bit manipulation (no log2/EUP error).
        bits = pltpu.bitcast(s_scale, jnp.int32)
        e = (bits >> 23) - 126                                             # frexp exponent
        m = s_scale * pltpu.bitcast((127 - e) << 23, jnp.float32)          # exact * 2^-e
        scale_m = jnp.floor(m * 256.0 + 0.5)                               # ROUND_HALF_UP (m>0)
        scale = scale_m * pltpu.bitcast((e + 119) << 23, jnp.float32)      # exact * 2^(e-8)
        scale_ref[...] = scale

        # --- hot path: per-row exact reciprocal (cheap, (TC,1)), then the
        #     per-element work is multiply/clamp/round only (VALU-light).
        inv = jnp.float32(1.0) / scale                                     # exact f32 divide
        y = jnp.clip(x * inv, thd_neg, thd_pos)
        xq_ref[...] = (jnp.round(y) * scale).astype(xq_ref.dtype)

    return kernel


# ---------------------------------------------------------------------------
# Module forward
# ---------------------------------------------------------------------------
def lsq_quantizer4weight_forward(x, s, initialized_alpha, bit=8, all_positive=False):
    """Returns (x_quantized, scale_new (C,1,1,1), updated s (C,), updated initialized_alpha)."""
    assert x.ndim == 4, "per_channel weight quantizer expects a 4D conv weight"
    thd_neg, thd_pos = _thresholds(bit, all_positive)

    C = int(x.shape[0])
    K = int(x.shape[1] * x.shape[2] * x.shape[3])

    # Native-dtype, copy-free views (no pad / astype / slice passes over x).
    x2 = x.reshape(C, K)
    s2 = s.astype(jnp.float32).reshape(C, 1)
    init_flag = (initialized_alpha.reshape(-1)[:1] != 0).astype(jnp.int32)

    # ---- generation-aware C tile -------------------------------------------
    dtype_bytes = np.dtype(x.dtype).itemsize
    Kp_est = _round_up(max(K, 128), 128)            # VMEM lane-padding estimate (sizing only)
    try:
        vmem_cap = int(pltpu.get_tpu_info().vmem_capacity_bytes)
    except Exception:
        vmem_cap = 64 << 20                         # conservative (v7x per-TC physical)
    # Live VMEM ~ 4x the x tile (in + out, double-buffered): budget ~ vmem/16,
    # clamped to [2 MiB, 8 MiB]  ->  ~8 MiB on v5e/v6e (128 MiB), ~4 MiB on v7x (64 MiB).
    tile_budget = min(max(vmem_cap // 16, 2 << 20), 8 << 20)
    max_rows = max(8, (tile_budget // (Kp_est * dtype_bytes)) // 8 * 8)
    tc = min(_round_up(C, 8), max_rows)
    if C > 8:                                       # keep >=2 grid steps for v7x's two TCs
        tc = min(tc, _round_up(-(-C // 2), 8))
    grid = (pl.cdiv(C, tc),)
    # TODO(synk): for pathological K (a single 8-row stripe exceeding the tile budget)
    # add a K-tiled two-pass body (abs-mean accumulate, then quant); here we only clamp
    # tc to 8 and raise the VMEM limit accordingly.
    tile_bytes = tc * Kp_est * dtype_bytes
    vmem_limit = int(min(max(4 * tile_bytes + (8 << 20), 32 << 20), vmem_cap))

    kernel = _make_fused_lsq_kernel(float(thd_neg), float(thd_pos), K, all_positive)

    xq2, scale2, s_new2 = pl.pallas_call(
        kernel,
        out_shape=(jax.ShapeDtypeStruct((C, K), x.dtype),
                   jax.ShapeDtypeStruct((C, 1), jnp.float32),
                   jax.ShapeDtypeStruct((C, 1), jnp.float32)),
        grid_spec=pltpu.PrefetchScalarGridSpec(
            num_scalar_prefetch=1,
            grid=grid,
            in_specs=[pl.BlockSpec((tc, K), lambda i, init: (i, 0)),
                      pl.BlockSpec((tc, 1), lambda i, init: (i, 0))],
            out_specs=[pl.BlockSpec((tc, K), lambda i, init: (i, 0)),
                       pl.BlockSpec((tc, 1), lambda i, init: (i, 0)),
                       pl.BlockSpec((tc, 1), lambda i, init: (i, 0))]),
        compiler_params=pltpu.CompilerParams(
            dimension_semantics=("parallel",),
            vmem_limit_bytes=vmem_limit),
    )(init_flag, x2, s2)

    xq = xq2.reshape(x.shape)
    scale_out = scale2.reshape(C, 1, 1, 1)
    s_new = s_new2[:, 0]
    new_initialized = jnp.ones_like(initialized_alpha)
    return xq, scale_out, s_new, new_initialized


# ---------------------------------------------------------------------------
# numpy reference (mirrors the PyTorch forward exactly, including the divide)
# ---------------------------------------------------------------------------
def _ref_forward(x, s, initialized, bit=8):
    thd_pos = 2 ** (bit - 1) - 1
    thd_neg = -2 ** (bit - 1)
    C = x.shape[0]
    x = x.astype(np.float32)
    if initialized[0] == 0:
        s = (2.0 * np.abs(x).mean(axis=(1, 2, 3)) / np.float32(thd_pos ** 0.5)).astype(np.float32)
    else:
        s = s.astype(np.float32)
    alpha = s[:, None]
    s_scale = np.where(alpha > np.float32(1e-5), alpha, np.float32(1e-5))
    m, e = np.frexp(s_scale)
    scale_m = np.floor(m * np.float32(256.0) + np.float32(0.5))
    scale_e = 8.0 - e
    scale_new = (scale_m / np.power(2.0, scale_e)).astype(np.float32)
    sn = scale_new.reshape(C, 1, 1, 1)
    y = x / sn
    y = np.clip(y, thd_neg, thd_pos)
    y = np.round(y)                       # half-to-even, same as torch.round
    return (y * sn).astype(np.float32), sn, s


def _check_xq(xq, xq_ref, scale_ref):
    """Allow bit-exact agreement OR a single-quant-step tie flip (reciprocal vs divide)."""
    xq = np.asarray(xq, dtype=np.float32)
    diff = np.abs(xq - xq_ref)
    scale_b = np.broadcast_to(scale_ref, xq_ref.shape).astype(np.float32)
    close = diff <= (1e-6 + 1e-5 * np.abs(xq_ref))
    tie_flip = np.abs(diff - scale_b) <= (1e-6 + 1e-5 * scale_b)
    assert np.all(close | tie_flip), "quantized output mismatch beyond a tie flip"
    assert np.mean(~close) <= 0.05, "too many rounding-tie discrepancies"


if __name__ == "__main__":
    key = jax.random.PRNGKey(0)
    # conv weight: Cout=12, Cin=4, KH=KW=3  (bit=8, per_channel_num=12)
    # C=12 exercises the ragged last C-block and a 2-step grid; K=36 exercises
    # the non-128-aligned lane dim.
    Cout, Cin, KH, KW = 12, 4, 3, 3
    x = (jax.random.normal(key, (Cout, Cin, KH, KW), dtype=jnp.float32) * 0.1)
    s = jnp.ones((Cout,), dtype=jnp.float32)                 # nn.Parameter torch.ones(per_channel_num)
    initialized_alpha = jnp.zeros((1,), dtype=jnp.float32)   # register_buffer

    # --- first call: lazy init path (initialized_alpha == 0)
    xq, scale_new, s_new, init_new = lsq_quantizer4weight_forward(
        x, s, initialized_alpha, bit=8, all_positive=False)
    jax.block_until_ready((xq, scale_new, s_new, init_new))

    xq_ref, scale_ref, s_ref = _ref_forward(
        np.asarray(x), np.asarray(s), np.asarray(initialized_alpha))
    np.testing.assert_allclose(np.asarray(scale_new), scale_ref, rtol=1e-6, atol=1e-8)
    np.testing.assert_allclose(np.asarray(s_new), s_ref, rtol=1e-5, atol=1e-8)
    _check_xq(xq, xq_ref, scale_ref)

    # --- second call: already-initialized path (s passthrough)
    xq2, scale_new2, s_new2, _ = lsq_quantizer4weight_forward(
        x, s_new, init_new, bit=8, all_positive=False)
    jax.block_until_ready((xq2, scale_new2, s_new2))

    xq_ref2, scale_ref2, s_ref2 = _ref_forward(
        np.asarray(x), np.asarray(s_new), np.asarray(init_new))
    np.testing.assert_allclose(np.asarray(scale_new2), scale_ref2, rtol=1e-6, atol=1e-8)
    np.testing.assert_allclose(np.asarray(s_new2), s_ref2, rtol=1e-5, atol=1e-8)
    _check_xq(xq2, xq_ref2, scale_ref2)

    print("KERNEL_OK")
</pallas_src>

<mosaic_0001>
module attributes {stable_mosaic.version = 11 : i64} {
  func.func @kernel(%arg0: i32, %arg1: memref<1xi32, #tpu.memory_space<smem>>, %arg2: memref<8x36xf32, #tpu.memory_space<vmem>>, %arg3: memref<8x1xf32, #tpu.memory_space<vmem>>, %arg4: memref<8x36xf32, #tpu.memory_space<vmem>>, %arg5: memref<8x1xf32, #tpu.memory_space<vmem>>, %arg6: memref<8x1xf32, #tpu.memory_space<vmem>>) attributes {dimension_semantics = [#tpu.dimension_semantics<parallel>], iteration_bounds = array<i64: 2>, scalar_prefetch = 1 : i64, scratch_operands = 0 : i64, tpu.core_type = #tpu.core_type<tc>, window_params = [{transform_indices = @transform_0, window_bounds = array<i64: 8, 36>}, {transform_indices = @transform_1, window_bounds = array<i64: 8, 1>}, {transform_indices = @transform_2, window_bounds = array<i64: 8, 36>}, {transform_indices = @transform_3, window_bounds = array<i64: 8, 1>}, {transform_indices = @transform_4, window_bounds = array<i64: 8, 1>}]} {
    %c0 = arith.constant 0 : index
    %c0_0 = arith.constant 0 : index
    %0 = vector.load %arg2[%c0, %c0_0] : memref<8x36xf32, #tpu.memory_space<vmem>>, vector<8x36xf32>
    %1 = math.absf %0 : vector<8x36xf32>
    %cst = arith.constant dense<0.000000e+00> : vector<8xf32>
    %2 = vector.multi_reduction <add>, %1, %cst [1] : vector<8x36xf32> to vector<8xf32>
    %3 = vector.shape_cast %2 : vector<8xf32> to vector<8x1xf32>
    %cst_1 = arith.constant 0.027777778 : f32
    %4 = vector.broadcast %cst_1 : f32 to vector<8x1xf32>
    %5 = arith.mulf %3, %4 : vector<8x1xf32>
    %cst_2 = arith.constant 2.000000e+00 : f32
    %6 = vector.broadcast %cst_2 : f32 to vector<8x1xf32>
    %7 = arith.mulf %6, %5 : vector<8x1xf32>
    %cst_3 = arith.constant 11.2694273 : f32
    %8 = vector.broadcast %cst_3 : f32 to vector<8x1xf32>
    %9 = arith.divf %7, %8 : vector<8x1xf32>
    %c0_4 = arith.constant 0 : index
    %10 = memref.load %arg1[%c0_4] : memref<1xi32, #tpu.memory_space<smem>>
    %c0_i32 = arith.constant 0 : i32
    %11 = arith.cmpi eq, %10, %c0_i32 : i32
    %c0_5 = arith.constant 0 : index
    %c0_6 = arith.constant 0 : index
    %12 = vector.load %arg3[%c0_5, %c0_6] : memref<8x1xf32, #tpu.memory_space<vmem>>, vector<8x1xf32>
    %13 = arith.select %11, %9, %12 : vector<8x1xf32>
    %c0_7 = arith.constant 0 : index
    %c0_8 = arith.constant 0 : index
    %14 = vector.load %arg6[%c0_7, %c0_8] : memref<8x1xf32, #tpu.memory_space<vmem>>, vector<8x1xf32>
    tpu.vector_store %arg6[%c0_7, %c0_8], %13 {strides = array<i32>} : memref<8x1xf32, #tpu.memory_space<vmem>>, vector<8x1xf32>,
    %cst_9 = arith.constant 9.99999974E-6 : f32
    %15 = vector.broadcast %cst_9 : f32 to vector<8x1xf32>
    %16 = arith.cmpf ogt, %13, %15 : vector<8x1xf32>
    %cst_10 = arith.constant 9.99999974E-6 : f32
    %17 = vector.broadcast %cst_10 : f32 to vector<8x1xf32>
    %18 = arith.select %16, %13, %17 : vector<8x1xi1>, vector<8x1xf32>
    %19 = tpu.bitcast %18 : vector<8x1xf32> -> vector<8x1xi32>
    %c23_i32 = arith.constant 23 : i32
    %20 = vector.broadcast %c23_i32 : i32 to vector<8x1xi32>
    %21 = arith.shrsi %19, %20 : vector<8x1xi32>
    %c126_i32 = arith.constant 126 : i32
    %22 = vector.broadcast %c126_i32 : i32 to vector<8x1xi32>
    %23 = arith.subi %21, %22 : vector<8x1xi32>
    %c127_i32 = arith.constant 127 : i32
    %24 = vector.broadcast %c127_i32 : i32 to vector<8x1xi32>
    %25 = arith.subi %24, %23 : vector<8x1xi32>
    %c23_i32_11 = arith.constant 23 : i32
    %26 = vector.broadcast %c23_i32_11 : i32 to vector<8x1xi32>
    %27 = arith.shli %25, %26 : vector<8x1xi32>
    %28 = tpu.bitcast %27 : vector<8x1xi32> -> vector<8x1xf32>
    %29 = arith.mulf %18, %28 : vector<8x1xf32>
    %cst_12 = arith.constant 2.560000e+02 : f32
    %30 = vector.broadcast %cst_12 : f32 to vector<8x1xf32>
    %31 = arith.mulf %29, %30 : vector<8x1xf32>
    %cst_13 = arith.constant 5.000000e-01 : f32
    %32 = vector.broadcast %cst_13 : f32 to vector<8x1xf32>
    %33 = arith.addf %31, %32 : vector<8x1xf32>
    %34 = math.floor %33 : vector<8x1xf32>
    %c119_i32 = arith.constant 119 : i32
    %35 = vector.broadcast %c119_i32 : i32 to vector<8x1xi32>
    %36 = arith.addi %23, %35 : vector<8x1xi32>
    %c23_i32_14 = arith.constant 23 : i32
    %37 = vector.broadcast %c23_i32_14 : i32 to vector<8x1xi32>
    %38 = arith.shli %36, %37 : vector<8x1xi32>
    %39 = tpu.bitcast %38 : vector<8x1xi32> -> vector<8x1xf32>
    %40 = arith.mulf %34, %39 : vector<8x1xf32>
    %c0_15 = arith.constant 0 : index
    %c0_16 = arith.constant 0 : index
    %41 = vector.load %arg5[%c0_15, %c0_16] : memref<8x1xf32, #tpu.memory_space<vmem>>, vector<8x1xf32>
    tpu.vector_store %arg5[%c0_15, %c0_16], %40 {strides = array<i32>} : memref<8x1xf32, #tpu.memory_space<vmem>>, vector<8x1xf32>,
    %cst_17 = arith.constant 1.000000e+00 : f32
    %42 = vector.broadcast %cst_17 : f32 to vector<8x1xf32>
    %43 = arith.divf %42, %40 : vector<8x1xf32>
    %44 = vector.broadcast %43 : vector<8x1xf32> to vector<8x36xf32>
    %45 = arith.mulf %0, %44 : vector<8x36xf32>
    %cst_18 = arith.constant -1.280000e+02 : f32
    %cst_19 = arith.constant 1.270000e+02 : f32
    %46 = vector.broadcast %cst_18 : f32 to vector<8x36xf32>
    %47 = arith.maximumf %46, %45 : vector<8x36xf32>
    %48 = vector.broadcast %cst_19 : f32 to vector<8x36xf32>
    %49 = arith.minimumf %48, %47 : vector<8x36xf32>
    %50 = math.roundeven %49 : vector<8x36xf32>
    %51 = vector.broadcast %40 : vector<8x1xf32> to vector<8x36xf32>
    %52 = arith.mulf %50, %51 : vector<8x36xf32>
    %c0_20 = arith.constant 0 : index
    %c0_21 = arith.constant 0 : index
    %53 = vector.load %arg4[%c0_20, %c0_21] : memref<8x36xf32, #tpu.memory_space<vmem>>, vector<8x36xf32>
    tpu.vector_store %arg4[%c0_20, %c0_21], %52 {strides = array<i32>} : memref<8x36xf32, #tpu.memory_space<vmem>>, vector<8x36xf32>,
    return
  }
  func.func @transform_0(%arg0: i32, %arg1: memref<1xi32, #tpu.memory_space<smem>>) -> (i32, i32) {
    %c0_i32 = arith.constant 0 : i32
    %c0_i32_0 = arith.constant 0 : i32
    return %arg0, %c0_i32 : i32, i32
  }
  func.func @transform_1(%arg0: i32, %arg1: memref<1xi32, #tpu.memory_space<smem>>) -> (i32, i32) {
    %c0_i32 = arith.constant 0 : i32
    %c0_i32_0 = arith.constant 0 : i32
    return %arg0, %c0_i32 : i32, i32
  }
  func.func @transform_2(%arg0: i32, %arg1: memref<1xi32, #tpu.memory_space<smem>>) -> (i32, i32) {
    %c0_i32 = arith.constant 0 : i32
    %c0_i32_0 = arith.constant 0 : i32
    return %arg0, %c0_i32 : i32, i32
  }
  func.func @transform_3(%arg0: i32, %arg1: memref<1xi32, #tpu.memory_space<smem>>) -> (i32, i32) {
    %c0_i32 = arith.constant 0 : i32
    %c0_i32_0 = arith.constant 0 : i32
    return %arg0, %c0_i32 : i32, i32
  }
  func.func @transform_4(%arg0: i32, %arg1: memref<1xi32, #tpu.memory_space<smem>>) -> (i32, i32) {
    %c0_i32 = arith.constant 0 : i32
    %c0_i32_0 = arith.constant 0 : i32
    return %arg0, %c0_i32 : i32, i32
  }
}

</mosaic_0001>

<bundles_post_ra>
// kernel: tpu_custom_call.1
= control target key start
LH: loop header
LB: loop body
LE: loop exit
PB: predicated region body
PF: predicated region fallthrough
CT: control target
= control target key end

     0   :  { %s703_s0 = inlined_call_operand.<no memory space> [shape: s32[1], index: 0, kind: input, shape index: {}]   ;;  %s704_s1 = inlined_call_operand.vmem [shape: f32[12,36], index: 1, kind: input, shape index: {}]   ;;  %s705_s2 = inlined_call_operand.vmem [shape: f32[12,1], index: 2, kind: input, shape index: {}]   ;;  %s706_s3 = inlined_call_operand.hbm [shape: f32[12,36], index: 3, kind: output, shape index: {0}]   ;;  %s707_s4 = inlined_call_operand.vmem [shape: f32[12,1], index: 4, kind: output, shape index: {1}]   ;;  %s708_s5 = inlined_call_operand.vmem [shape: f32[12,1], index: 5, kind: output, shape index: {2}]  }
   0x1   :  { %11 = sst [smem:[#allocation3]] %s703_s0 }
   0x2   :  { %12 = vsyncpa [#allocation5], 0 }
   0x3   :  { %14 = vsyncpa [#allocation5 + $0x1], 0  ;;  %s597_s20 = smov 0   ;;  %s599_s21 = smov 0  }
   0x4   :  { %s601_s22 = smov 0   ;;  %s603_s23 = smov 0  }
   0x5 LB: > { %s618_s0 = sadd.s32 4294967295, %s560_s23   ;;  %s434_s24 = sadd.s32 4294967294, %s560_s23   ;;  %s560_s23 = sphi %s603_s23, %s714_s23   ;;  %s556_s22 = sphi %s601_s22, %s713_s22   ;;  %s552_s21 = sphi %s599_s21, %s712_s21   ;;  %s548_s20 = sphi %s597_s20, %s711_s20  }
   0x6   : > { %s622_s25 = sadd.s32 1, %s560_s23   ;;  %s79_s26 = sadd.s32 1, %s556_s22 }
   0x7   : > { %s76_s27 = ssub.s32 %s560_s23, %s622_s25  ;;  %p89_p0 = scmp.ne.s32.totalorder %s556_s22, %s552_s21 }
   0x8   : > { %p77_p1 = scmp.eq.s32.totalorder %s76_s27, 0  ;;  %p90_p2 = scmp.eq.s32.totalorder %s618_s0, 1 }
   0x9   : > { %p95_p3 = scmp.ne.s32.totalorder %s552_s21, %s548_s20  ;;  %p96_p4 = scmp.eq.s32.totalorder %s434_s24, 1 }
   0xa   : > { %s633_s28 = scalar_select %p77_p1, %s556_s22, %s79_s26  }
   0xb   : > { %p635_p5 = por %p90_p2, %p89_p0  ;;  %p639_p6 = por %p96_p4, %p95_p3 }
   0xc   : > { %p437_p7 = scmp.ge.s32.totalorder %s560_s23, 1  ;;  %p180_p8 = scmp.lt.s32.totalorder %s560_s23, 3 }
   0xe   : > { %p181_p9 = pnand %p437_p7, %p180_p8 }
   0xf   : > { %p217_p10 = scmp.lt.s32.totalorder (!%p181_p9), %s618_s0, 1  ;;  %s243_s11 = sld [smem:[#allocation3]] (!%p181_p9) }
  0x10   : > { %184 = sbr.rel (%p181_p9) target bundleno = 362 (0x16a), region = 28  ;;  %s202_s27 = sand.u32 (!%p181_p9), 1, %s552_s21  }
  0x11   : > { %s288_s13 = scalar_lea.sflag (!%p181_p9), [#allocation5], %s202_s27 }
  0x15   : > { %s218_s6 = scalar_select %p217_p10, %s618_s0, 1  ;;  %vm235_vm0 = vcmask 293888   ;;  %v562_v3 = vmov 0   ;;  %vm250_vm2 = vcmask 7168  }
  0x16   : > { %497 = vset.pattern.permute.xlu1 %v562_v3  ;;  %496 = vset.pattern.permute.xlu0 %v562_v3  ;;  %p244_p11 = scmp.eq.s32.totalorder %s243_s11, 0 }
  0x17   : > { %s647_s7 = sshll.u32 %s218_s6, 3  ;;  %s438_s6 = sshll.u32 %s202_s27, 3 }
  0x18   : > { %s220_s10 = scalar_lea.vmem %s704_s1, %s647_s7  ;;  %s224_s15 = scalar_lea.vmem %s705_s2, %s647_s7 }
  0x19   : > { %v233_v0 = vld [vmem:[%s220_s10] sm:$0xff]  ;;  %s246_s12 = scalar_select %p244_p11, 1, 0 }
  0x1a   : > { %v234_v1 = vand.u32 2147483647, %v233_v0  ;;  %v245_v8 = vld [vmem:[%s224_s15] sm:$0xff]  ;;  %s232_s18 = scalar_lea.vmem %s708_s5, %s647_s7  ;;  %s228_s26 = scalar_lea.vmem %s707_s4, %s647_s7 }
  0x1b   : > { %v247_v5 = vstv %s246_s12  ;;  %s445_s7 = sshll.u32 %s618_s0, 7  ;;  %s204_s8 = scalar_lea.vmem [#allocation4], %s438_s6 }
  0x1c   : > { %v236_v2 = vsel %vm235_vm0, %v234_v1, 0.0  ;;  %vm248_vm1 = vcmp.eq.s32.totalorder %v247_v5, 1  ;;  %s309_s9 = sshll.u32 %s204_s8, 4  ;;  %s307_s12 = scalar_lea.hbm %s706_s3, %s445_s7  ;;  %s310_s9 = int_to_ptr.vmem [resolvable:$true] %s309_s9 }
  0x1d   : > { %237 = vadd.xlane.f32.xlu0 %v236_v2  ;;  %s500_s14 = scalar_lea.vmem %s310_s9, 128  ;;  %s563_s0 = smov [#allocation4]  }
  0x1e   : > { %p501_p12 = scmp.ne.s32.totalorder %s310_s9, %s500_s14  ;;  %s504_s15 = sshll.u32 %s563_s0, 4  ;;  %s505_s15 = int_to_ptr.vmem [resolvable:$false] %s504_s15 }
  0x1f   : > { %s506_s16 = scalar_lea.vmem %s505_s15, 256  ;;  %p507_p1 = scmp.lt.s32.totalorder %s310_s9, %s505_s15 }
  0x20   : > { %p502_p13 = pnand %p501_p12, %p635_p5  ;;  %p508_p2 = scmp.lt.s32.totalorder %s506_s16, %s500_s14 }
  0x22   : > { %p503_p0 = pneg %p502_p13  ;;  %p509_p3 = por %p508_p2, %p507_p1 }
  0x24   : > { %p510_p4 = pnand %p509_p3, %p503_p0 }
  0xa6   : > { %v238_v4 = vpop.xlane.xlu0 %237 }
  0xa7   : > { %v239_v6 = vmul.f32 0.027777778, %v238_v4 }
  0xa9   : > { %v240_v7 = vmul.f32 2.0, %v239_v6 }
  0xab   : > { %v242_v9 = vmul.f32 0.088735655, %v240_v7 }
  0xad   : > { %v249_v10 = vsel %vm248_vm1, %v242_v9, %v245_v8 }
  0xae   : > { %251 = vst.msk [vmem:[%s232_s18] sm:$0xff] %vm250_vm2, %v249_v10  ;;  %vm252_vm3 = vcmp.gt.f32.partialorder %v249_v10, 1e-05 }
  0xaf   : > { %v253_v11 = vsel %vm252_vm3, %v249_v10, 1e-05 }
  0xb0   : > { %v255_v12 = vshra.s32 %v253_v11, 23 }
  0xb2   : > { %v443_v13 = vadd.s32 4294967170, %v255_v12 }
  0xb4   : > { %v257_v14 = vsub.s32 127, %v443_v13  ;;  %v264_v18 = vadd.s32 119, %v443_v13 }
  0xb6   : > { %v258_v15 = vshll.u32 %v257_v14, 23  ;;  %v265_v21 = vshll.u32 %v264_v18, 23 }
  0xb8   : > { %v260_v16 = vmul.f32 %v258_v15, %v253_v11 }
  0xba   : > { %v261_v17 = vmul.f32 256.0, %v260_v16 }
  0xbc   : > { %v262_v19 = vadd.f32 0.5, %v261_v17 }
  0xbe   : > { %v263_v20 = vfloor.f32 %v262_v19 }
  0xc0   : > { %v267_v22 = vmul.f32 %v265_v21, %v263_v20 }
  0xc2   : > { %282 = vperm.xlu1 %497, %v267_v22   ;;  %268 = vst.msk [vmem:[%s228_s26] sm:$0xff] %vm250_vm2, %v267_v22  ;;  %498 = vrcp.f32 %v267_v22 }
  0xcf   : > { %v499_v23 = vpop.eup %498 }
  0xd0   : > { %273 = vperm.xlu0 %496, %v499_v23  }
 0x13d   : > { %v283_v34 = vpop.permute.xlu1 %282 }
 0x14b   : > { %v274_v24 = vpop.permute.xlu0 %273 }
 0x14c   : > { %v276_v25 = vmul.f32 %v274_v24, %v233_v0 }
 0x14e   : > { %v277_v26 = vmax.f32 %v276_v25, -128.0 }
 0x150   : > { %v278_v27 = vmin.f32 %v277_v26, 127.0 }
 0x152   : > { %v450_v28 = vcvt.f32.s32 %v278_v27  ;;  %v448_v30 = vand.u32 2147483647, %v278_v27  ;;  %v453_v32 = vand.u32 2147483648, %v278_v27 }
 0x154   : > { %v451_v29 = vcvt.s32.f32 %v450_v28  ;;  %vm449_vm4 = vcmp.lt.f32.partialorder %v448_v30, 8388608.0 }
 0x156   : > { %v452_v31 = vand.u32 2147483647, %v451_v29 }
 0x158   : > { %v454_v33 = vor.u32 %v453_v32, %v452_v31 }
 0x15a   : > { %v455_v35 = vsel %vm449_vm4, %v454_v33, %v278_v27 }
 0x15b   : > { %v285_v36 = vmul.f32 %v455_v35, %v283_v34 }
 0x15d   : > { %286 = vst.msk [vmem:[%s204_s8] sm:$0xff] %vm235_vm0, %v285_v36 }
 0x15e   : > { %513 = shalt.err (!%p510_p4)
}
 0x15f   : > { %s514_s17 = scalar_lea.hbm %s307_s12, 128  ;;  %s518_s24 = scalar_lea.hbm %s706_s3, 256 }
 0x160   : > { %p515_p7 = scmp.ne.s32.totalorder %s307_s12, %s514_s17  ;;  %p519_p10 = scmp.lt.s32.totalorder %s307_s12, %s706_s3 }
 0x161   : > { %p520_p11 = scmp.lt.s32.totalorder %s518_s24, %s514_s17 }
 0x162   : > { %p516_p8 = pnand %p515_p7, %p635_p5 }
 0x163   : > { %p521_p12 = por %p520_p11, %p519_p10 }
 0x164   : > { %p517_p9 = pneg %p516_p8 }
 0x166   : > { %p522_p13 = pnand %p521_p12, %p517_p9 }
 0x168   : > { %525 = shalt.err (!%p522_p13)
}
 0x169   : > { %456 = dma.vmem_to_hbm [thread:$0]  (%p635_p5), %s310_s9, 128, %s307_s12, %s288_s13  }
 0x16a PF: > { %p462_p0 = scmp.ge.s32.totalorder %s560_s23, 2  ;;  %s327_s6 = sand.u32 1, %s548_s20  }
 0x16b   : > { %s328_s7 = scalar_lea.sflag [#allocation5], %s327_s6 }
 0x16c   : > { %p459_p1 = pnand %p462_p0, %p639_p6 }
 0x16e   : > { %p460_p2 = pneg %p459_p1 }
 0x170   : > { %543 = dma.done.wait (%p460_p2), %s328_s7, 128  }
 0x171   : > { %545 = vsyncadd (%p460_p2), %s328_s7, 4294967168  ;;  %p17_p3 = scmp.ge.s32.totalorder %s622_s25, 4   ;;  %s711_s20 = smov %s552_s21 }
 0x172   : > { %s712_s21 = smov %s556_s22  ;;  %s713_s22 = smov %s633_s28 }
 0x173   : > { %s714_s23 = smov %s622_s25  ;;  %19 = sbr.rel (!%p17_p3) target bundleno = 5 (0x5), region = 90 }
 0x178   :  { %347 = vsyncpa [#allocation5], 1 }
 0x179   :  { %349 = vsyncpa [#allocation5 + $0x1], 1 }

</bundles_post_ra>
